<compile_context>
chip_gen: v7x
topology: tpu7x:2x2x1
jax: 0.10.0
libtpu: 0.0.40
codegen_flags: <defaults>
</compile_context>

<pallas_src>
import math
import functools

import jax
import jax.numpy as jnp
from jax import lax
from jax.experimental import pallas as pl
from jax.experimental.pallas import tpu as pltpu


def _round_up(x, m):
    return ((x + m - 1) // m) * m


# --------------------------------------------------------------------------
# Row-tiled Linear:  (rows, K) @ (K, N) + (1, N)
# --------------------------------------------------------------------------
def _linear_kernel(x_ref, w_ref, b_ref, o_ref):
    # x_ref: (TM, K) compute dtype, w_ref: (K, N) compute dtype,
    # b_ref: (1, N) f32, o_ref: (TM, N).  f32 accumulation on the MXU.
    acc = jnp.dot(x_ref[...], w_ref[...], preferred_element_type=jnp.float32)
    o_ref[...] = (acc + b_ref[...]).astype(o_ref.dtype)


def linear(x, w, b, *, out_dtype=None, block_rows=512):
    """x: (rows, K); w: (K, N) (pre-transposed weight); b: (1, N) float32."""
    rows, K = x.shape
    N = w.shape[1]
    out_dtype = out_dtype or x.dtype

    tm = min(block_rows, _round_up(rows, 8))
    # Keep the single parallel axis deep enough to feed both v7x TensorCores
    # and the DMA pipeline when the row count is large but grid is short.
    if rows >= 8 * 256 and rows // tm < 8 and tm > 256:
        tm = 256
    grid = (pl.cdiv(rows, tm),)

    # VMEM budget: double-buffered x & out blocks + resident (double-buffered)
    # weight/bias + slack.  Capped so it never exceeds v7x's 64 MiB physical.
    est = (2 * tm * K * x.dtype.itemsize
           + 2 * tm * N * jnp.dtype(out_dtype).itemsize
           + 2 * (K * N + N) * w.dtype.itemsize)
    vmem_limit = int(min(max(est + (4 << 20), 32 << 20), 64 << 20))

    return pl.pallas_call(
        _linear_kernel,
        out_shape=jax.ShapeDtypeStruct((rows, N), out_dtype),
        grid_spec=pltpu.PrefetchScalarGridSpec(
            num_scalar_prefetch=0,
            grid=grid,
            in_specs=[
                pl.BlockSpec((tm, K), lambda i: (i, 0)),
                pl.BlockSpec((K, N), lambda i: (0, 0)),
                pl.BlockSpec((1, N), lambda i: (0, 0)),
            ],
            out_specs=pl.BlockSpec((tm, N), lambda i: (i, 0)),
        ),
        compiler_params=pltpu.CompilerParams(
            dimension_semantics=("parallel",),
            vmem_limit_bytes=vmem_limit),
    )(x, w, b)


# --------------------------------------------------------------------------
# Causal flash attention (online softmax) over (B*H, T, Dh)
# --------------------------------------------------------------------------
def _attn_kernel(q_ref, k_ref, v_ref, o_ref, m_sc, l_sc, acc_sc,
                 *, scale, block_q, block_k):
    qi = pl.program_id(1)
    ki = pl.program_id(2)

    @pl.when(ki == 0)
    def _init():
        m_sc[...] = jnp.full_like(m_sc, -1e30)
        l_sc[...] = jnp.zeros_like(l_sc)
        acc_sc[...] = jnp.zeros_like(acc_sc)

    def _scores():
        # Fold softmax scale into the (tq, Dh) operand (tk/Dh fewer VPU muls).
        q = q_ref[...] * scale
        # NT contraction (contract last dims): no transpose of the K tile.
        return lax.dot_general(q, k_ref[...],
                               dimension_numbers=(((1,), (1,)), ((), ())),
                               preferred_element_type=jnp.float32)

    def _update(s):
        m_prev = m_sc[...]
        m_new = jnp.maximum(m_prev, s.max(axis=-1, keepdims=True))
        alpha = jnp.exp(m_prev - m_new)
        p = jnp.exp(s - m_new)                              # f32
        l_sc[...] = alpha * l_sc[...] + p.sum(axis=-1, keepdims=True)
        acc_sc[...] = alpha * acc_sc[...] + jnp.dot(
            p.astype(v_ref.dtype), v_ref[...],
            preferred_element_type=jnp.float32)
        m_sc[...] = m_new

    q_first = qi * block_q
    q_last = q_first + block_q - 1
    k_first = ki * block_k
    k_last = k_first + block_k - 1

    # Fully-visible block (entirely below the diagonal): no masking work.
    @pl.when(k_last <= q_first)
    def _full():
        _update(_scores())

    # Diagonal-straddling block: apply the causal mask to the scores.
    @pl.when(jnp.logical_and(k_last > q_first, k_first <= q_last))
    def _diag():
        s = _scores()
        row_ids = q_first + lax.broadcasted_iota(jnp.int32, s.shape, 0)
        col_ids = k_first + lax.broadcasted_iota(jnp.int32, s.shape, 1)
        s = jnp.where(col_ids <= row_ids, s, -1e30)
        _update(s)

    # Fully-masked blocks (k_first > q_last): no compute, and the clamped K/V
    # index_map means no new DMA either.

    @pl.when(ki == pl.num_programs(2) - 1)
    def _finalize():
        inv_l = pl.reciprocal(l_sc[...])        # exact; multiply, not divide
        o_ref[...] = (acc_sc[...] * inv_l).astype(o_ref.dtype)


def causal_attention(q, k, v, *, block_q=256, block_k=256):
    """q, k, v: (B*H, T, Dh) -> (B*H, T, Dh).  Defaults match v6e/v7x 256-wide
    MXU; pass block_q=block_k=128 on v5e."""
    BH, T, Dh = q.shape
    tq = min(block_q, _round_up(T, 8))
    tk = min(block_k, _round_up(T, 8))
    grid = (BH, pl.cdiv(T, tq), pl.cdiv(T, tk))
    scale = 1.0 / math.sqrt(Dh)

    def q_index(b, i, j):
        return (b, i, 0)

    def kv_index(b, i, j):
        # Clamp fully-masked kv blocks to the last causally-needed block so
        # the skipped grid steps re-use the already-fetched tile (no DMA).
        last_needed = (i * tq + tq - 1) // tk
        return (b, jnp.minimum(j, last_needed), 0)

    kernel = functools.partial(_attn_kernel, scale=scale,
                               block_q=tq, block_k=tk)
    return pl.pallas_call(
        kernel,
        out_shape=jax.ShapeDtypeStruct((BH, T, Dh), q.dtype),
        grid_spec=pltpu.PrefetchScalarGridSpec(
            num_scalar_prefetch=0,
            grid=grid,
            in_specs=[
                pl.BlockSpec((None, tq, Dh), q_index),
                pl.BlockSpec((None, tk, Dh), kv_index),
                pl.BlockSpec((None, tk, Dh), kv_index),
            ],
            out_specs=pl.BlockSpec((None, tq, Dh), q_index),
            scratch_shapes=[
                pltpu.VMEM((tq, 1), jnp.float32),    # running max
                pltpu.VMEM((tq, 1), jnp.float32),    # running denom
                pltpu.VMEM((tq, Dh), jnp.float32),   # output accumulator
            ],
        ),
        compiler_params=pltpu.CompilerParams(
            dimension_semantics=("parallel", "parallel", "arbitrary")),
    )(q, k, v)


# --------------------------------------------------------------------------
# Full CausalSelfAttention forward
# --------------------------------------------------------------------------
def causal_self_attention(x, w_attn, b_attn, w_proj, b_proj, n_head,
                          *, compute_dtype=jnp.bfloat16,
                          block_rows=512, block_q=256, block_k=256):
    """x: (B, T, C); w_attn: (C, 3C); b_attn: (1, 3C);
    w_proj: (C, C); b_proj: (1, C).  Weights are stored pre-transposed.
    Matmul operands are cast to `compute_dtype` (bf16 by default) with f32
    accumulation; softmax statistics stay in f32."""
    B, T, C = x.shape
    H = n_head
    Dh = C // H
    out_dtype = x.dtype
    cd = compute_dtype

    # QKV projection (row-tiled, lane-dense (rows, 3C) output), bf16 MXU.
    qkv = linear(x.reshape(B * T, C).astype(cd),
                 w_attn.astype(cd), b_attn.astype(jnp.float32),
                 out_dtype=cd, block_rows=block_rows)

    # Split heads (layout plumbing done in XLA outside the kernels).
    qkv = qkv.reshape(B, T, 3, H, Dh)
    q = qkv[:, :, 0].transpose(0, 2, 1, 3).reshape(B * H, T, Dh)
    k = qkv[:, :, 1].transpose(0, 2, 1, 3).reshape(B * H, T, Dh)
    v = qkv[:, :, 2].transpose(0, 2, 1, 3).reshape(B * H, T, Dh)

    y = causal_attention(q, k, v, block_q=block_q, block_k=block_k)

    # Merge heads and output projection.
    y = y.reshape(B, H, T, Dh).transpose(0, 2, 1, 3).reshape(B * T, C)
    out = linear(y.astype(cd), w_proj.astype(cd), b_proj.astype(jnp.float32),
                 out_dtype=out_dtype, block_rows=block_rows)
    return out.reshape(B, T, C)


# --------------------------------------------------------------------------
# Pure-JAX reference (mirrors the PyTorch forward in eval mode)
# --------------------------------------------------------------------------
def causal_self_attention_ref(x, w_attn, b_attn, w_proj, b_proj, n_head):
    B, T, C = x.shape
    H = n_head
    Dh = C // H
    qkv = x @ w_attn + b_attn
    q, k, v = jnp.split(qkv, 3, axis=-1)
    q = q.reshape(B, T, H, Dh).transpose(0, 2, 1, 3)
    k = k.reshape(B, T, H, Dh).transpose(0, 2, 1, 3)
    v = v.reshape(B, T, H, Dh).transpose(0, 2, 1, 3)
    att = (q @ jnp.swapaxes(k, -1, -2)) * (1.0 / math.sqrt(Dh))
    mask = jnp.tril(jnp.ones((T, T), dtype=bool))
    att = jnp.where(mask[None, None], att, -jnp.inf)
    att = jax.nn.softmax(att, axis=-1)
    y = att @ v
    y = y.transpose(0, 2, 1, 3).reshape(B, T, C)
    return y @ w_proj + b_proj


if __name__ == "__main__":
    # Small config consistent with the module: n_embd % n_head == 0.
    batch, seq_len, n_embd, n_head = 2, 8, 32, 4

    key = jax.random.PRNGKey(0)
    kx, kw1, kb1, kw2, kb2 = jax.random.split(key, 5)

    x = jax.random.normal(kx, (batch, seq_len, n_embd), dtype=jnp.float32)

    bound1 = 1.0 / math.sqrt(n_embd)
    # c_attn: Linear(n_embd, 3*n_embd), weight stored pre-transposed (C, 3C)
    w_attn = jax.random.uniform(kw1, (n_embd, 3 * n_embd), jnp.float32,
                                -bound1, bound1)
    b_attn = jax.random.uniform(kb1, (1, 3 * n_embd), jnp.float32,
                                -bound1, bound1)
    # c_proj: Linear(n_embd, n_embd), weight stored pre-transposed (C, C)
    w_proj = jax.random.uniform(kw2, (n_embd, n_embd), jnp.float32,
                                -bound1, bound1)
    b_proj = jax.random.uniform(kb2, (1, n_embd), jnp.float32,
                                -bound1, bound1)

    ref = causal_self_attention_ref(x, w_attn, b_attn, w_proj, b_proj, n_head)

    # Production path: bf16 MXU operands, f32 accumulation / softmax stats.
    out_bf16 = causal_self_attention(x, w_attn, b_attn, w_proj, b_proj, n_head,
                                     compute_dtype=jnp.bfloat16)
    out_bf16 = jax.block_until_ready(out_bf16)
    assert out_bf16.shape == (batch, seq_len, n_embd)
    assert jnp.allclose(out_bf16.astype(jnp.float32), ref,
                        atol=1e-1, rtol=1e-1), \
        float(jnp.abs(out_bf16.astype(jnp.float32) - ref).max())

    # Exact-math check of the same kernels in f32 (tight tolerance).
    out_f32 = causal_self_attention(x, w_attn, b_attn, w_proj, b_proj, n_head,
                                    compute_dtype=jnp.float32)
    out_f32 = jax.block_until_ready(out_f32)
    assert out_f32.shape == (batch, seq_len, n_embd)
    assert jnp.allclose(out_f32, ref, atol=2e-5, rtol=2e-5), \
        float(jnp.abs(out_f32 - ref).max())

    print("KERNEL_OK")
</pallas_src>

<mosaic_0001>
module attributes {stable_mosaic.version = 11 : i64} {
  func.func @_linear_kernel(%arg0: i32, %arg1: memref<16x32xbf16, #tpu.memory_space<vmem>>, %arg2: memref<32x96xbf16, #tpu.memory_space<vmem>>, %arg3: memref<1x96xf32, #tpu.memory_space<vmem>>, %arg4: memref<16x96xbf16, #tpu.memory_space<vmem>>) attributes {dimension_semantics = [#tpu.dimension_semantics<parallel>], iteration_bounds = array<i64: 1>, scalar_prefetch = 0 : i64, scratch_operands = 0 : i64, tpu.core_type = #tpu.core_type<tc>, window_params = [{transform_indices = @transform_0, window_bounds = array<i64: 16, 32>}, {pipeline_mode = #tpu.pipeline_mode<synchronous>, transform_indices = @transform_1, window_bounds = array<i64: 32, 96>}, {pipeline_mode = #tpu.pipeline_mode<synchronous>, transform_indices = @transform_2, window_bounds = array<i64: 1, 96>}, {transform_indices = @transform_3, window_bounds = array<i64: 16, 96>}]} {
    %c0 = arith.constant 0 : index
    %c0_0 = arith.constant 0 : index
    %0 = vector.load %arg1[%c0, %c0_0] : memref<16x32xbf16, #tpu.memory_space<vmem>>, vector<16x32xbf16>
    %c0_1 = arith.constant 0 : index
    %c0_2 = arith.constant 0 : index
    %1 = vector.load %arg2[%c0_1, %c0_2] : memref<32x96xbf16, #tpu.memory_space<vmem>>, vector<32x96xbf16>
    %cst = arith.constant dense<0.000000e+00> : vector<16x96xf32>
    %2 = tpu.matmul %0, %1, %cst {dimension_numbers = #tpu.dot_dimension_numbers<[1], [0], [0], [1], [0, 0, 1, 1], [], []>} : vector<16x32xbf16>, vector<32x96xbf16>, vector<16x96xf32> -> vector<16x96xf32>
    %c0_3 = arith.constant 0 : index
    %c0_4 = arith.constant 0 : index
    %3 = vector.load %arg3[%c0_3, %c0_4] : memref<1x96xf32, #tpu.memory_space<vmem>>, vector<1x96xf32>
    %4 = vector.broadcast %3 : vector<1x96xf32> to vector<16x96xf32>
    %5 = arith.addf %2, %4 : vector<16x96xf32>
    %6 = arith.truncf %5 : vector<16x96xf32> to vector<16x96xbf16>
    %c0_5 = arith.constant 0 : index
    %c0_6 = arith.constant 0 : index
    %7 = vector.load %arg4[%c0_5, %c0_6] : memref<16x96xbf16, #tpu.memory_space<vmem>>, vector<16x96xbf16>
    tpu.vector_store %arg4[%c0_5, %c0_6], %6 {strides = array<i32>} : memref<16x96xbf16, #tpu.memory_space<vmem>>, vector<16x96xbf16>,
    return
  }
  func.func @transform_0(%arg0: i32) -> (i32, i32) {
    %c0_i32 = arith.constant 0 : i32
    %c0_i32_0 = arith.constant 0 : i32
    return %arg0, %c0_i32 : i32, i32
  }
  func.func @transform_1(%arg0: i32) -> (i32, i32) {
    %c0_i32 = arith.constant 0 : i32
    %c0_i32_0 = arith.constant 0 : i32
    %c0_i32_1 = arith.constant 0 : i32
    return %c0_i32, %c0_i32_0 : i32, i32
  }
  func.func @transform_2(%arg0: i32) -> (i32, i32) {
    %c0_i32 = arith.constant 0 : i32
    %c0_i32_0 = arith.constant 0 : i32
    %c0_i32_1 = arith.constant 0 : i32
    return %c0_i32, %c0_i32_0 : i32, i32
  }
  func.func @transform_3(%arg0: i32) -> (i32, i32) {
    %c0_i32 = arith.constant 0 : i32
    %c0_i32_0 = arith.constant 0 : i32
    return %arg0, %c0_i32 : i32, i32
  }
}

</mosaic_0001>

<bundles_post_ra>
// kernel: tpu_custom_call.1
= control target key start
LH: loop header
LB: loop body
LE: loop exit
PB: predicated region body
PF: predicated region fallthrough
CT: control target
= control target key end

     0   :  { %8 = vsyncpa [#allocation3], 0  ;;  %s325_s0 = inlined_call_operand.hbm [shape: bf16[16,32], index: 0, kind: input, shape index: {}]   ;;  %s326_s1 = inlined_call_operand.hbm [shape: bf16[32,96], index: 1, kind: input, shape index: {}]   ;;  %s327_s2 = inlined_call_operand.vmem [shape: f32[1,96], index: 2, kind: input, shape index: {}]   ;;  %s328_s3 = inlined_call_operand.hbm [shape: bf16[16,96], index: 3, kind: output, shape index: {}]  }
   0x1   :  { %9 = vsyncpa [#allocation6], 0 }
   0x2   :  { %10 = vsyncpa [#allocation4], 0  ;;  %s250_s12 = smov [#allocation2]   ;;  %s178_s16 = scalar_lea.hbm %s325_s0, 128 }
   0x3   :  { %s16_s13 = sshll.u32 %s250_s12, 4  ;;  %p179_p0 = scmp.ne.s32.totalorder %s325_s0, %s178_s16  ;;  %s17_s13 = int_to_ptr.vmem [resolvable:$true] %s16_s13 }
   0x4   :  { %p182_p1 = scmp.lt.u32.totalorder %s178_s16, %s325_s0 }
   0x6   :  { %p184_p2 = pnand %p182_p1, %p179_p0 }
   0x8   :  { %187 = shalt.err (!%p184_p2)
}
   0x9   :  { %s188_s21 = scalar_lea.vmem %s17_s13, 128  ;;  %p193_p4 = scmp.lt.s32.totalorder %s17_s13, %s17_s13 }
   0xa   :  { %p189_p3 = scmp.ne.s32.totalorder %s17_s13, %s188_s21  ;;  %p194_p5 = scmp.lt.s32.totalorder %s188_s21, %s188_s21 }
   0xc   :  { %p195_p6 = por %p194_p5, %p193_p4 }
   0xe   :  { %p196_p7 = pnand %p195_p6, %p189_p3 }
  0x10   :  { %199 = shalt.err (!%p196_p7)
}
  0x11   :  { %s251_s22 = smov 64   ;;  %s252_s23 = smov 4  }
  0x12   :  { %22 = dma.hbm_to_vmem [thread:$0]  %s325_s0, 128, %s17_s13, [#allocation3], %s251_s22, %s251_s22, %s252_s23  }
  0x13   :  { %s253_s26 = smov [#allocation5]   ;;  %s200_s30 = scalar_lea.hbm %s326_s1, 256 }
  0x14   :  { %s28_s27 = sshll.u32 %s253_s26, 4  ;;  %p201_p8 = scmp.ne.s32.totalorder %s326_s1, %s200_s30  ;;  %s29_s27 = int_to_ptr.vmem [resolvable:$true] %s28_s27 }
  0x15   :  { %p204_p9 = scmp.lt.u32.totalorder %s200_s30, %s326_s1 }
  0x17   :  { %p206_p10 = pnand %p204_p9, %p201_p8 }
  0x19   :  { %209 = shalt.err (!%p206_p10)
}
  0x1a   :  { %s210_s8 = scalar_lea.vmem %s29_s27, 256  ;;  %p215_p12 = scmp.lt.s32.totalorder %s29_s27, %s29_s27 }
  0x1b   :  { %p211_p11 = scmp.ne.s32.totalorder %s29_s27, %s210_s8  ;;  %p216_p13 = scmp.lt.s32.totalorder %s210_s8, %s210_s8 }
  0x1d   :  { %p217_p0 = por %p216_p13, %p215_p12 }
  0x1f   :  { %p218_p1 = pnand %p217_p0, %p211_p11 }
  0x21   :  { %221 = shalt.err (!%p218_p1)
}
  0x22   :  { %34 = dma.hbm_to_vmem [thread:$0]  %s326_s1, 256, %s29_s27, [#allocation6], %s251_s22, %s251_s22, %s252_s23  }
  0x23   :  { %244 = dma.done.wait [#allocation3], 128  }
  0x24   :  { %245 = vsyncadd [#allocation3], 4294967168 }
  0x25   :  { %246 = dma.done.wait [#allocation6], 256  }
  0x26   :  { %247 = vsyncadd [#allocation6], 4294967040  ;;  %v254_v0 = vmov 0.0   ;;  %vm255_vm0 = vmmov 0   ;;  %v175_v1 = vld [vmem:[#allocation5] sm:$0xff]   ;;  %v176_v2 = vld [vmem:[#allocation5 + $0x8] sm:$0xff]  }
  0x27   :  { %160 = vmatprep.subr.bf16.mxu0 %v254_v0  ;;  %164 = vmatprep.mubr.msk.bf16.mxu0 %vm255_vm0, %v254_v0  ;;  %v177_v3 = vld [vmem:[#allocation2] sm:$0xff]   ;;  %vm74_vm1 = vcmask 261120   ;;  %vm127_vm2 = vcmask 781312   ;;  %s256_s1 = smov [#allocation7]  }
  0x28   :  { %161 = vmatpush3.bf16.msra.mxu0 %v175_v1  ;;  %v148_v4 = vld [vmem:[%s327_s2] ss:$0 sm:$0xff]  ;;  %s135_s12 = sshll.u32 %s256_s1, 4  ;;  %s136_s12 = int_to_ptr.vmem [resolvable:$true] %s135_s12 }
  0x29   :  { %162 = vmatprep.subr.bf16.mxu0 %v254_v0  ;;  %s222_s13 = scalar_lea.vmem %s136_s12, 128  ;;  %p227_p3 = scmp.lt.s32.totalorder %s136_s12, %s136_s12 }
  0x2a   :  { %p223_p2 = scmp.ne.s32.totalorder %s136_s12, %s222_s13  ;;  %p228_p4 = scmp.lt.s32.totalorder %s222_s13, %s222_s13 }
  0x2c   :  { %163 = vmatpush3.bf16.msra.mxu0 %v176_v2  ;;  %p229_p5 = por %p228_p4, %p227_p3 }
  0x2e   :  { %p230_p6 = pnand %p229_p5, %p223_p2 }
  0x2f   :  { %165 = vmatmul.mubr.msk.bf16.vlgmr.msra.gmra.mrb[0].mxu0 %vm74_vm1, %v177_v3 }
 0x102   :  { %v112_v5 = vpop.f32.mrb[0].mxu0 }
 0x103   :  { %v113_v6 = vadd.f32 %v148_v4, %v112_v5  ;;  %v166_v7 = vpop.f32.mrb[1].mxu0 }
 0x104   :  { %v115_v8 = vpop.f32.mrb[2].mxu0 }
 0x105   :  { %v155_v9 = vpack.c.bf16 %v113_v6, %v113_v6  ;;  %v116_v10 = vadd.f32 %v148_v4, %v115_v8  ;;  %v167_v11 = vpop.f32.mrb[3].mxu0 }
 0x107   :  { %v156_v12 = vpack.c.bf16 %v116_v10, %v116_v10  ;;  %128 = vst.msk [vmem:[#allocation7] sm:$0xf] %vm127_vm2, %v155_v9 }
 0x109   :  { %129 = vst.msk [vmem:[#allocation7 + $0x4] sm:$0xf] %vm127_vm2, %v156_v12 }
 0x10a   :  { %233 = shalt.err (!%p230_p6)
}
 0x10b   :  { %s234_s15 = scalar_lea.hbm %s328_s3, 128 }
 0x10c   :  { %p235_p7 = scmp.ne.s32.totalorder %s328_s3, %s234_s15  ;;  %p238_p8 = scmp.lt.u32.totalorder %s234_s15, %s328_s3 }
 0x10e   :  { %p240_p9 = pnand %p238_p8, %p235_p7 }
 0x110   :  { %243 = shalt.err (!%p240_p9)
}
 0x111   :  { %141 = dma.vmem_to_hbm [thread:$0]  %s136_s12, 128, %s328_s3, [#allocation4], %s251_s22, %s251_s22, %s252_s23  }
 0x112   :  { %248 = dma.done.wait [#allocation4], 128  }
 0x113   :  { %249 = vsyncadd [#allocation4], 4294967168 }
 0x114   :  { %145 = vsyncpa [#allocation3], 1 }
 0x115   :  { %146 = vsyncpa [#allocation6], 1 }
 0x116   :  { %147 = vsyncpa [#allocation4], 1 }

</bundles_post_ra>
